<compile_context>
chip_gen: v7x
topology: tpu7x:2x2x1
jax: 0.10.0
libtpu: 0.0.40
codegen_flags: <defaults>
</compile_context>

<pallas_src>
import functools
import numpy as np
import jax
import jax.numpy as jnp
from jax.experimental import pallas as pl
from jax.experimental.pallas import tpu as pltpu


def _round_up(x, m):
    return (x + m - 1) // m * m


# ---------------------------------------------------------------------------
# Pass 1: global (training-mode) BatchNorm statistics of conv1 output.
# ---------------------------------------------------------------------------
def _nalp_stats_kernel(A, TB, B, concat_ref, w1_ref, b1_ref, sum_ref, sumsq_ref):
    t = pl.program_id(0)

    @pl.when(t == 0)
    def _():
        sum_ref[...] = jnp.zeros_like(sum_ref)
        sumsq_ref[...] = jnp.zeros_like(sumsq_ref)

    # Mask rows belonging to batch padding so statistics match the real batch.
    row = jax.lax.broadcasted_iota(jnp.int32, (TB, 1), 0)
    valid = ((t * TB + row) < B).astype(jnp.float32)                     # [TB, 1]

    s = jnp.zeros(sum_ref.shape, jnp.float32)
    ss = jnp.zeros(sumsq_ref.shape, jnp.float32)
    for a in range(A):                                  # arity: small & static
        conv = jnp.dot(concat_ref[a], w1_ref[...],
                       preferred_element_type=jnp.float32) + b1_ref[...]  # [TB, Fp]
        cm = conv * valid
        s = s + jnp.sum(cm, axis=0, keepdims=True)
        ss = ss + jnp.sum(cm * conv, axis=0, keepdims=True)
    sum_ref[...] += s
    sumsq_ref[...] += ss


# ---------------------------------------------------------------------------
# Pass 2: normalized conv -> fused g_FCN -> pairwise min (algebraic) -> f_FCN.
# ---------------------------------------------------------------------------
def _nalp_main_kernel(A, Gp, concat_ref, w1_ref, scale_ref, shift_ref,
                      wg2_ref, bg_ref, wf_ref, bf_ref, out_ref):
    min_uv = None
    for a in range(A):
        xa = concat_ref[a]                                               # [TB, 2E]
        conv = jnp.dot(xa, w1_ref[...],
                       preferred_element_type=jnp.float32)               # [TB, Fp]
        m = jnp.maximum(conv * scale_ref[...] + shift_ref[...], 0.0)     # BN + relu
        uv = jnp.dot(m, wg2_ref[...],
                     preferred_element_type=jnp.float32)                 # [TB, 2Gp]
        min_uv = uv if min_uv is None else jnp.minimum(min_uv, uv)
    # Exact: min over all (i, j) role/value pairs of relu(U_j + V_i + bg).
    min_val = jnp.maximum(min_uv[:, :Gp] + min_uv[:, Gp:] + bg_ref[...], 0.0)  # [TB, Gp]
    out_ref[...] = jnp.dot(min_val, wf_ref[...],
                           preferred_element_type=jnp.float32) + bf_ref[...]   # [TB, 128]


# ---------------------------------------------------------------------------
# Wrapper.
# ---------------------------------------------------------------------------
def nalp_forward(x_batch, arity, params, *, block_b=256):
    B = x_batch.shape[0]
    A = arity
    E = params["emb_roles"].shape[1]
    F_ = params["w1"].shape[1]
    G = params["wg"].shape[1]
    K = 2 * E
    Fp = _round_up(F_, 128)
    Gp = _round_up(G, 128)

    TB = min(block_b, _round_up(B, 8))
    num_tiles = pl.cdiv(B, TB)
    B_pad = num_tiles * TB

    # --- embedding gather + layout (plain JAX glue) ---
    # TODO(synk): fuse the role/value embedding gather into the kernel (scalar
    # prefetch of ids + manual DMA gather) to avoid the extra HBM round trip of
    # `concat`; kept in the wrapper here.
    roles_ids = x_batch[:, 0::2].reshape(-1)
    values_ids = x_batch[:, 1::2].reshape(-1)
    r = jnp.take(params["emb_roles"], roles_ids, axis=0).reshape(B, A, E)
    v = jnp.take(params["emb_values"], values_ids, axis=0).reshape(B, A, E)
    concat = jnp.concatenate([r, v], axis=2)                 # [B, A, 2E]
    concat3d = jnp.transpose(concat, (1, 0, 2))              # [A, B, 2E]
    concat3d = jnp.pad(concat3d, ((0, 0), (0, B_pad - B), (0, 0)))

    # --- lane-padded parameter packing (exact: pad channels stay 0) ---
    w1p = jnp.zeros((K, Fp), jnp.float32).at[:, :F_].set(params["w1"])
    b1p = jnp.zeros((1, Fp), jnp.float32).at[0, :F_].set(params["b1"])
    gammap = jnp.zeros((Fp,), jnp.float32).at[:F_].set(params["gamma"])
    betap = jnp.zeros((Fp,), jnp.float32).at[:F_].set(params["beta"])
    # Fused g_FCN weight: [:, :Gp] applies to the pair's "first" row m[b, j],
    # [:, Gp:] applies to the "second" row m[b, i]  (matches create_role_value_pairs).
    wg2 = (jnp.zeros((Fp, 2 * Gp), jnp.float32)
           .at[:F_, :G].set(params["wg"][:F_, :])
           .at[:F_, Gp:Gp + G].set(params["wg"][F_:, :]))
    bgp = jnp.zeros((1, Gp), jnp.float32).at[0, :G].set(params["bg"])
    wfp = jnp.zeros((Gp, 128), jnp.float32).at[:G, 0].set(params["wf"][:, 0])
    bfp = jnp.zeros((1, 128), jnp.float32).at[0, 0].set(params["bf"][0])

    concat_spec = pl.BlockSpec((A, TB, K), lambda t: (0, t, 0))
    resident = lambda shape: pl.BlockSpec(shape, lambda t: (0, 0))

    # --- pass 1: global BN statistics (training mode, biased variance) ---
    sums, sumsq = pl.pallas_call(
        functools.partial(_nalp_stats_kernel, A, TB, B),
        out_shape=(jax.ShapeDtypeStruct((1, Fp), jnp.float32),
                   jax.ShapeDtypeStruct((1, Fp), jnp.float32)),
        grid=(num_tiles,),
        in_specs=[concat_spec, resident((K, Fp)), resident((1, Fp))],
        out_specs=(resident((1, Fp)), resident((1, Fp))),
        compiler_params=pltpu.CompilerParams(
            dimension_semantics=("arbitrary",)),
    )(concat3d, w1p, b1p)

    n = jnp.float32(A * B)
    mean = sums[0] / n
    var = jnp.maximum(sumsq[0] / n - mean * mean, 0.0)       # biased variance
    scale = gammap * jax.lax.rsqrt(var + 1e-5)               # [Fp]
    shift = (b1p[0] - mean) * scale + betap                  # conv1 bias folded in
    scale = scale.reshape(1, Fp)
    shift = shift.reshape(1, Fp)

    # --- pass 2: batch-tiled main kernel ---
    flops = int(2 * A * B_pad * (K * Fp + Fp * 2 * Gp) + 2 * B_pad * Gp * 128)
    bytes_accessed = int(4 * (A * B_pad * K + K * Fp + Fp * 2 * Gp
                              + Gp * 128 + B_pad * 128))
    out = pl.pallas_call(
        functools.partial(_nalp_main_kernel, A, Gp),
        out_shape=jax.ShapeDtypeStruct((B_pad, 128), jnp.float32),
        grid=(num_tiles,),
        in_specs=[concat_spec, resident((K, Fp)), resident((1, Fp)),
                  resident((1, Fp)), resident((Fp, 2 * Gp)), resident((1, Gp)),
                  resident((Gp, 128)), resident((1, 128))],
        out_specs=pl.BlockSpec((TB, 128), lambda t: (t, 0)),
        compiler_params=pltpu.CompilerParams(
            dimension_semantics=("parallel",),
            vmem_limit_bytes=32 * 1024 * 1024),
        cost_estimate=pl.CostEstimate(flops=flops, transcendentals=0,
                                      bytes_accessed=bytes_accessed),
    )(concat3d, w1p, scale, shift, wg2, bgp, wfp, bfp)

    return out[:B, 0:1]


# ---------------------------------------------------------------------------
# Pure-JAX reference (replicates the PyTorch forward, incl. the original
# tile/repeat/concat pair construction) — cross-checks the kernel decomposition.
# ---------------------------------------------------------------------------
def nalp_reference(x_batch, arity, params):
    B = x_batch.shape[0]
    E = params["emb_roles"].shape[1]
    F_ = params["w1"].shape[1]
    r = params["emb_roles"][x_batch[:, 0::2].reshape(-1)].reshape(B, arity, E)
    v = params["emb_values"][x_batch[:, 1::2].reshape(-1)].reshape(B, arity, E)
    concat = jnp.concatenate([r, v], axis=2)                               # [B, A, 2E]
    conv = jnp.einsum("bae,ef->baf", concat, params["w1"]) + params["b1"]  # [B, A, F]
    flat = conv.reshape(B * arity, F_)
    mean = flat.mean(axis=0)
    var = ((flat - mean) ** 2).mean(axis=0)
    normed = (flat - mean) / jnp.sqrt(var + 1e-5)
    m = jnp.maximum(normed * params["gamma"] + params["beta"], 0.0).reshape(B, arity, F_)
    first = jnp.tile(m, (1, arity, 1))                                     # [B, A*A, F]
    second = jnp.repeat(m, arity, axis=1)                                  # [B, A*A, F]
    pairs = jnp.concatenate([first, second], axis=2)                       # [B, A*A, 2F]
    g = jnp.maximum(jnp.einsum("bpf,fg->bpg", pairs, params["wg"]) + params["bg"], 0.0)
    min_val = jnp.min(g, axis=1)                                           # [B, G]
    return min_val @ params["wf"] + params["bf"]                           # [B, 1]


def init_params(key, num_roles, num_values, E, F_, G):
    ks = jax.random.split(key, 5)
    bound = (1.0 / E) ** 0.5
    emb_roles = jax.random.uniform(ks[0], (num_roles, E), jnp.float32, -bound, bound)
    emb_roles = emb_roles.at[0].set(0.0)     # padding_idx=0
    emb_values = jax.random.uniform(ks[1], (num_values, E), jnp.float32, -bound, bound)
    emb_values = emb_values.at[0].set(0.0)   # padding_idx=0
    # TODO(synk): truncated_normal_ approximated with clipped normal (std=0.1)
    w1 = (jnp.clip(jax.random.normal(ks[2], (2 * E, F_), jnp.float32), -2.0, 2.0) * 0.1)
    b1 = jnp.zeros((F_,), jnp.float32)
    gamma = jnp.ones((F_,), jnp.float32)
    beta = jnp.zeros((F_,), jnp.float32)
    wg = jax.random.normal(ks[3], (2 * F_, G), jnp.float32) * (2.0 / (2 * F_ + G)) ** 0.5
    bg = jnp.zeros((G,), jnp.float32)
    wf = jax.random.normal(ks[4], (G, 1), jnp.float32) * (2.0 / (G + 1)) ** 0.5
    bf = jnp.zeros((1,), jnp.float32)
    return dict(emb_roles=emb_roles, emb_values=emb_values, w1=w1, b1=b1,
                gamma=gamma, beta=beta, wg=wg, bg=bg, wf=wf, bf=bf)


if __name__ == "__main__":
    key = jax.random.PRNGKey(0)
    num_roles, num_values = 50, 100
    E, F_, G = 16, 8, 32          # embedding_size, num_filters, ngfcn (small)
    B, arity = 12, 2              # B=12 with block_b=8 -> 2 batch tiles (+ padding)

    pkey, rkey, vkey = jax.random.split(key, 3)
    params = init_params(pkey, num_roles, num_values, E, F_, G)

    roles = jax.random.randint(rkey, (B, arity), 1, num_roles)
    values = jax.random.randint(vkey, (B, arity), 1, num_values)
    x_batch = jnp.zeros((B, 2 * arity), jnp.int32)
    x_batch = x_batch.at[:, 0::2].set(roles).at[:, 1::2].set(values)

    out = nalp_forward(x_batch, arity, params, block_b=8)
    jax.block_until_ready(out)

    ref = nalp_reference(x_batch, arity, params)
    np.testing.assert_allclose(np.asarray(out), np.asarray(ref), rtol=5e-4, atol=1e-5)
    print("KERNEL_OK")
</pallas_src>

<mosaic_0001>
module attributes {stable_mosaic.version = 11 : i64} {
  func.func @_nalp_stats_kernel(%arg0: i32, %arg1: memref<2x8x32xf32, #tpu.memory_space<vmem>>, %arg2: memref<32x128xf32, #tpu.memory_space<vmem>>, %arg3: memref<1x128xf32, #tpu.memory_space<vmem>>, %arg4: memref<1x128xf32, #tpu.memory_space<vmem>>, %arg5: memref<1x128xf32, #tpu.memory_space<vmem>>) attributes {dimension_semantics = [#tpu.dimension_semantics<arbitrary>], iteration_bounds = array<i64: 2>, scalar_prefetch = 0 : i64, scratch_operands = 0 : i64, tpu.core_type = #tpu.core_type<tc>, window_params = [{transform_indices = @transform_0, window_bounds = array<i64: 2, 8, 32>}, {pipeline_mode = #tpu.pipeline_mode<synchronous>, transform_indices = @transform_1, window_bounds = array<i64: 32, 128>}, {pipeline_mode = #tpu.pipeline_mode<synchronous>, transform_indices = @transform_2, window_bounds = array<i64: 1, 128>}, {pipeline_mode = #tpu.pipeline_mode<synchronous>, transform_indices = @transform_3, window_bounds = array<i64: 1, 128>}, {pipeline_mode = #tpu.pipeline_mode<synchronous>, transform_indices = @transform_4, window_bounds = array<i64: 1, 128>}]} {
    %c0_i32 = arith.constant 0 : i32
    %0 = arith.cmpi eq, %arg0, %c0_i32 : i32
    %1 = arith.extui %0 : i1 to i32
    %c0_i32_0 = arith.constant 0 : i32
    %2 = arith.cmpi ne, %1, %c0_i32_0 : i32
    scf.if %2 {
      %cst_28 = arith.constant 0.000000e+00 : f32
      %51 = vector.broadcast %cst_28 : f32 to vector<1x128xf32>
      %c0_29 = arith.constant 0 : index
      %c0_30 = arith.constant 0 : index
      %52 = vector.load %arg4[%c0_29, %c0_30] : memref<1x128xf32, #tpu.memory_space<vmem>>, vector<1x128xf32>
      tpu.vector_store %arg4[%c0_29, %c0_30], %51 {strides = array<i32>} : memref<1x128xf32, #tpu.memory_space<vmem>>, vector<1x128xf32>,
      %cst_31 = arith.constant 0.000000e+00 : f32
      %53 = vector.broadcast %cst_31 : f32 to vector<1x128xf32>
      %c0_32 = arith.constant 0 : index
      %c0_33 = arith.constant 0 : index
      %54 = vector.load %arg5[%c0_32, %c0_33] : memref<1x128xf32, #tpu.memory_space<vmem>>, vector<1x128xf32>
      tpu.vector_store %arg5[%c0_32, %c0_33], %53 {strides = array<i32>} : memref<1x128xf32, #tpu.memory_space<vmem>>, vector<1x128xf32>,
    } else {
    }
    %3 = tpu.iota {dimensions = array<i32: 0>} : vector<8x1xi32>
    %c8_i32 = arith.constant 8 : i32
    %4 = arith.muli %arg0, %c8_i32 : i32
    %5 = vector.broadcast %4 : i32 to vector<8x1xi32>
    %6 = arith.addi %5, %3 : vector<8x1xi32>
    %c12_i32 = arith.constant 12 : i32
    %7 = vector.broadcast %c12_i32 : i32 to vector<8x1xi32>
    %8 = arith.cmpi slt, %6, %7 : vector<8x1xi32>
    %9 = arith.extui %8 : vector<8x1xi1> to vector<8x1xi32>
    %10 = arith.sitofp %9 : vector<8x1xi32> to vector<8x1xf32>
    %cst = arith.constant 0.000000e+00 : f32
    %11 = vector.broadcast %cst : f32 to vector<1x128xf32>
    %cst_1 = arith.constant 0.000000e+00 : f32
    %12 = vector.broadcast %cst_1 : f32 to vector<1x128xf32>
    %c0 = arith.constant 0 : index
    %c0_2 = arith.constant 0 : index
    %c0_3 = arith.constant 0 : index
    %13 = vector.load %arg1[%c0, %c0_2, %c0_3] : memref<2x8x32xf32, #tpu.memory_space<vmem>>, vector<1x8x32xf32>
    %14 = vector.shape_cast %13 : vector<1x8x32xf32> to vector<8x32xf32>
    %c0_4 = arith.constant 0 : index
    %c0_5 = arith.constant 0 : index
    %15 = vector.load %arg2[%c0_4, %c0_5] : memref<32x128xf32, #tpu.memory_space<vmem>>, vector<32x128xf32>
    %cst_6 = arith.constant dense<0.000000e+00> : vector<8x128xf32>
    %16 = tpu.matmul %14, %15, %cst_6 {dimension_numbers = #tpu.dot_dimension_numbers<[1], [0], [0], [1], [0, 0, 1, 1], [], []>} : vector<8x32xf32>, vector<32x128xf32>, vector<8x128xf32> -> vector<8x128xf32>
    %c0_7 = arith.constant 0 : index
    %c0_8 = arith.constant 0 : index
    %17 = vector.load %arg3[%c0_7, %c0_8] : memref<1x128xf32, #tpu.memory_space<vmem>>, vector<1x128xf32>
    %18 = vector.broadcast %17 : vector<1x128xf32> to vector<8x128xf32>
    %19 = arith.addf %16, %18 : vector<8x128xf32>
    %20 = vector.broadcast %10 : vector<8x1xf32> to vector<8x128xf32>
    %21 = arith.mulf %19, %20 : vector<8x128xf32>
    %cst_9 = arith.constant dense<0.000000e+00> : vector<128xf32>
    %22 = vector.multi_reduction <add>, %21, %cst_9 [0] : vector<8x128xf32> to vector<128xf32>
    %23 = vector.shape_cast %22 : vector<128xf32> to vector<1x128xf32>
    %24 = arith.addf %11, %23 : vector<1x128xf32>
    %25 = arith.mulf %21, %19 : vector<8x128xf32>
    %cst_10 = arith.constant dense<0.000000e+00> : vector<128xf32>
    %26 = vector.multi_reduction <add>, %25, %cst_10 [0] : vector<8x128xf32> to vector<128xf32>
    %27 = vector.shape_cast %26 : vector<128xf32> to vector<1x128xf32>
    %28 = arith.addf %12, %27 : vector<1x128xf32>
    %c1 = arith.constant 1 : index
    %c0_11 = arith.constant 0 : index
    %c0_12 = arith.constant 0 : index
    %29 = vector.load %arg1[%c1, %c0_11, %c0_12] : memref<2x8x32xf32, #tpu.memory_space<vmem>>, vector<1x8x32xf32>
    %30 = vector.shape_cast %29 : vector<1x8x32xf32> to vector<8x32xf32>
    %c0_13 = arith.constant 0 : index
    %c0_14 = arith.constant 0 : index
    %31 = vector.load %arg2[%c0_13, %c0_14] : memref<32x128xf32, #tpu.memory_space<vmem>>, vector<32x128xf32>
    %cst_15 = arith.constant dense<0.000000e+00> : vector<8x128xf32>
    %32 = tpu.matmul %30, %31, %cst_15 {dimension_numbers = #tpu.dot_dimension_numbers<[1], [0], [0], [1], [0, 0, 1, 1], [], []>} : vector<8x32xf32>, vector<32x128xf32>, vector<8x128xf32> -> vector<8x128xf32>
    %c0_16 = arith.constant 0 : index
    %c0_17 = arith.constant 0 : index
    %33 = vector.load %arg3[%c0_16, %c0_17] : memref<1x128xf32, #tpu.memory_space<vmem>>, vector<1x128xf32>
    %34 = vector.broadcast %33 : vector<1x128xf32> to vector<8x128xf32>
    %35 = arith.addf %32, %34 : vector<8x128xf32>
    %36 = vector.broadcast %10 : vector<8x1xf32> to vector<8x128xf32>
    %37 = arith.mulf %35, %36 : vector<8x128xf32>
    %cst_18 = arith.constant dense<0.000000e+00> : vector<128xf32>
    %38 = vector.multi_reduction <add>, %37, %cst_18 [0] : vector<8x128xf32> to vector<128xf32>
    %39 = vector.shape_cast %38 : vector<128xf32> to vector<1x128xf32>
    %40 = arith.addf %24, %39 : vector<1x128xf32>
    %41 = arith.mulf %37, %35 : vector<8x128xf32>
    %cst_19 = arith.constant dense<0.000000e+00> : vector<128xf32>
    %42 = vector.multi_reduction <add>, %41, %cst_19 [0] : vector<8x128xf32> to vector<128xf32>
    %43 = vector.shape_cast %42 : vector<128xf32> to vector<1x128xf32>
    %44 = arith.addf %28, %43 : vector<1x128xf32>
    %c0_20 = arith.constant 0 : index
    %c0_21 = arith.constant 0 : index
    %45 = vector.load %arg4[%c0_20, %c0_21] : memref<1x128xf32, #tpu.memory_space<vmem>>, vector<1x128xf32>
    %46 = arith.addf %45, %40 : vector<1x128xf32>
    %c0_22 = arith.constant 0 : index
    %c0_23 = arith.constant 0 : index
    %47 = vector.load %arg4[%c0_22, %c0_23] : memref<1x128xf32, #tpu.memory_space<vmem>>, vector<1x128xf32>
    tpu.vector_store %arg4[%c0_22, %c0_23], %46 {strides = array<i32>} : memref<1x128xf32, #tpu.memory_space<vmem>>, vector<1x128xf32>,
    %c0_24 = arith.constant 0 : index
    %c0_25 = arith.constant 0 : index
    %48 = vector.load %arg5[%c0_24, %c0_25] : memref<1x128xf32, #tpu.memory_space<vmem>>, vector<1x128xf32>
    %49 = arith.addf %48, %44 : vector<1x128xf32>
    %c0_26 = arith.constant 0 : index
    %c0_27 = arith.constant 0 : index
    %50 = vector.load %arg5[%c0_26, %c0_27] : memref<1x128xf32, #tpu.memory_space<vmem>>, vector<1x128xf32>
    tpu.vector_store %arg5[%c0_26, %c0_27], %49 {strides = array<i32>} : memref<1x128xf32, #tpu.memory_space<vmem>>, vector<1x128xf32>,
    return
  }
  func.func @transform_0(%arg0: i32) -> (i32, i32, i32) {
    %c0_i32 = arith.constant 0 : i32
    %c0_i32_0 = arith.constant 0 : i32
    %c0_i32_1 = arith.constant 0 : i32
    return %c0_i32, %arg0, %c0_i32_0 : i32, i32, i32
  }
  func.func @transform_1(%arg0: i32) -> (i32, i32) {
    %c0_i32 = arith.constant 0 : i32
    %c0_i32_0 = arith.constant 0 : i32
    %c0_i32_1 = arith.constant 0 : i32
    return %c0_i32, %c0_i32_0 : i32, i32
  }
  func.func @transform_2(%arg0: i32) -> (i32, i32) {
    %c0_i32 = arith.constant 0 : i32
    %c0_i32_0 = arith.constant 0 : i32
    %c0_i32_1 = arith.constant 0 : i32
    return %c0_i32, %c0_i32_0 : i32, i32
  }
  func.func @transform_3(%arg0: i32) -> (i32, i32) {
    %c0_i32 = arith.constant 0 : i32
    %c0_i32_0 = arith.constant 0 : i32
    %c0_i32_1 = arith.constant 0 : i32
    return %c0_i32, %c0_i32_0 : i32, i32
  }
  func.func @transform_4(%arg0: i32) -> (i32, i32) {
    %c0_i32 = arith.constant 0 : i32
    %c0_i32_0 = arith.constant 0 : i32
    %c0_i32_1 = arith.constant 0 : i32
    return %c0_i32, %c0_i32_0 : i32, i32
  }
}

</mosaic_0001>

<bundles_post_ra>
// kernel: tpu_custom_call.1
= control target key start
LH: loop header
LB: loop body
LE: loop exit
PB: predicated region body
PF: predicated region fallthrough
CT: control target
= control target key end

     0   :  { %10 = vsyncpa [#allocation3], 0  ;;  %s1065_s0 = inlined_call_operand.hbm [shape: f32[2,16,32], index: 0, kind: input, shape index: {}]   ;;  %s1066_s1 = inlined_call_operand.hbm [shape: f32[32,128], index: 1, kind: input, shape index: {}]   ;;  %s1067_s2 = inlined_call_operand.vmem [shape: f32[1,128], index: 2, kind: input, shape index: {}]   ;;  %s1068_s3 = inlined_call_operand.hbm [shape: f32[1,128], index: 3, kind: output, shape index: {0}]   ;;  %s1069_s4 = inlined_call_operand.hbm [shape: f32[1,128], index: 4, kind: output, shape index: {1}]  }
   0x1   :  { %12 = vsyncpa [#allocation3 + $0x1], 0 }
   0x2   :  { %13 = vsyncpa [#allocation6], 0 }
   0x3   :  { %14 = vsyncpa [#allocation4], 0 }
   0x4   :  { %15 = vsyncpa [#allocation9], 0  ;;  %s850_s15 = smov 0   ;;  %s852_s16 = smov 0  }
   0x5   :  { %s854_s17 = smov 0   ;;  %s856_s18 = smov 0  }
   0x6 LB: > { %s869_s19 = sadd.s32 4294967295, %s812_s18   ;;  %s872_s20 = sadd.s32 1, %s812_s18   ;;  %s812_s18 = sphi %s856_s18, %s1088_s18   ;;  %s808_s17 = sphi %s854_s17, %s1087_s17   ;;  %s804_s16 = sphi %s852_s16, %s1086_s16   ;;  %s800_s15 = sphi %s850_s15, %s1085_s15  }
   0x7   : > { %s25_s21 = ssub.s32 %s812_s18, %s872_s20  ;;  %s28_s22 = sadd.s32 1, %s808_s17 }
   0x8   : > { %p26_p0 = scmp.eq.s32.totalorder %s25_s21, 0  ;;  %p35_p1 = scmp.ne.s32.totalorder %s808_s17, %s804_s16 }
   0x9   : > { %p36_p2 = scmp.eq.s32.totalorder %s812_s18, 0  ;;  %p41_p3 = scmp.ne.s32.totalorder %s804_s16, %s800_s15 }
   0xa   : > { %s882_s23 = scalar_select %p26_p0, %s808_s17, %s28_s22  }
   0xb   : > { %p884_p4 = por %p36_p2, %p35_p1  ;;  %p1070_p5 = scmp.eq.s32.totalorder %s869_s19, 0 }
   0xc   : > { %p520_p6 = scmp.ge.s32.totalorder %s812_s18, 1  ;;  %p136_p7 = scmp.lt.s32.totalorder %s812_s18, 3 }
   0xd   : > { %p893_p8 = por %p1070_p5, %p41_p3  ;;  %s814_s27 = smov [#allocation5]  }
   0xe   : > { %p898_p10 = pnand %p520_p6, %p136_p7  ;;  %s148_s28 = sshll.u32 %s814_s27, 4  ;;  %s149_s28 = int_to_ptr.vmem [resolvable:$true] %s148_s28 }
   0xf   : > { %s1075_s25 = scalar_select %p893_p8, 1, 0 }
  0x10   : > { %s1076_s26 = scalar_select %p898_p10, 1, 0 }
  0x11   : > { %p599_p11 = pneg %p898_p10  ;;  %p608_p13 = scmp.lt.s32.totalorder %s812_s18, 2 }
  0x12   : > { %s165_s30 = sand.u32 1, %s808_s17   ;;  %s524_s5 = sshll.u32 %s812_s18, 7 }
  0x13   : > { %p906_p12 = pnand %p599_p11, %p1070_p5  ;;  %p915_p0 = pnand %p608_p13, %p884_p4 }
  0x14   : > { %s656_s9 = scalar_lea.hbm %s1066_s1, 512 }
  0x15   : > { %s1078_s6 = scalar_select %p915_p0, 1, 0 }
  0x16   : > { %p657_p1 = scmp.ne.s32.totalorder %s1066_s1, %s656_s9  ;;  %p658_p2 = pneg %p906_p12 }
  0x17   : > { %p663_p7 = scmp.lt.u32.totalorder %s656_s9, %s1066_s1 }
  0x18   : > { %p659_p3 = pnand %p658_p2, %p657_p1 }
  0x1a   : > { %p660_p6 = pneg %p659_p3 }
  0x1c   : > { %p665_p4 = pnand %p663_p7, %p660_p6 }
  0x1e   : > { %668 = shalt.err (!%p665_p4)
}
  0x1f   : > { %s669_s14 = scalar_lea.vmem %s149_s28, 512  ;;  %p677_p5 = scmp.lt.s32.totalorder %s149_s28, %s149_s28 }
  0x20   : > { %p670_p11 = scmp.ne.s32.totalorder %s149_s28, %s669_s14  ;;  %p678_p8 = scmp.lt.s32.totalorder %s669_s14, %s669_s14 }
  0x22   : > { %p672_p13 = pnand %p670_p11, %p658_p2  ;;  %p679_p10 = por %p678_p8, %p677_p5 }
  0x24   : > { %p673_p9 = pneg %p672_p13 }
  0x26   : > { %p680_p0 = pnand %p679_p10, %p673_p9 }
  0x28   : > { %683 = shalt.err (!%p680_p0)
}
  0x29   : > { %s815_s15 = smov 128   ;;  %s816_s18 = smov 8  }
  0x2a   : > { %602 = dma.hbm_to_vmem [thread:$0]  (!%p906_p12), %s1066_s1, 512, %s149_s28, [#allocation6], %s815_s15, %s815_s15, %s816_s18  }
  0x2b   : > { %s523_s24 = sshll.u32 %s165_s30, 4  ;;  %s941_s8 = scalar_lea.hbm %s1065_s0, %s524_s5 }
  0x2c   : > { %s169_s9 = scalar_lea.vmem [#allocation2], %s523_s24  ;;  %s945_s29 = scalar_lea.sflag [#allocation3], %s165_s30 }
  0x2d   : > { %s175_s10 = sshll.u32 %s169_s9, 4  ;;  %s684_s11 = scalar_lea.hbm %s941_s8, 256  ;;  %s943_s10 = int_to_ptr.vmem [resolvable:$true] %s175_s10 }
  0x2e   : > { %p685_p5 = scmp.ne.s32.totalorder %s941_s8, %s684_s11  ;;  %p1079_p8 = scmp.ne.s32.totalorder %s1078_s6, 0 }
  0x2f   : > { %s689_s12 = scalar_lea.hbm %s1065_s0, 512  ;;  %p690_p0 = scmp.lt.u32.totalorder %s941_s8, %s1065_s0 }
  0x30   : > { %p686_p9 = pneg %p1079_p8  ;;  %p691_p1 = scmp.lt.u32.totalorder %s689_s12, %s684_s11 }
  0x31   : > { %p693_p3 = scmp.lt.u32.totalorder %s684_s11, %s941_s8 }
  0x32   : > { %p687_p10 = pnand %p686_p9, %p685_p5  ;;  %p692_p2 = por %p691_p1, %p690_p0 }
  0x34   : > { %p688_p12 = pneg %p687_p10  ;;  %p694_p6 = por %p693_p3, %p692_p2 }
  0x36   : > { %p695_p7 = pnand %p694_p6, %p688_p12 }
  0x38   : > { %698 = shalt.err (!%p695_p7)
}
  0x39   : > { %s699_s30 = scalar_lea.vmem %s943_s10, 256  ;;  %s817_s21 = smov [#allocation2]  }
  0x3a   : > { %p700_p4 = scmp.ne.s32.totalorder %s943_s10, %s699_s30  ;;  %s704_s22 = sshll.u32 %s817_s21, 4  ;;  %s705_s22 = int_to_ptr.vmem [resolvable:$false] %s704_s22 }
  0x3b   : > { %s706_s24 = scalar_lea.vmem %s705_s22, 512  ;;  %p707_p5 = scmp.lt.s32.totalorder %s943_s10, %s705_s22 }
  0x3c   : > { %p702_p11 = pnand %p700_p4, %p686_p9  ;;  %p708_p10 = scmp.lt.s32.totalorder %s706_s24, %s699_s30 }
  0x3e   : > { %p703_p13 = pneg %p702_p11  ;;  %p709_p0 = por %p708_p10, %p707_p5 }
  0x40   : > { %p710_p1 = pnand %p709_p0, %p703_p13 }
  0x42   : > { %713 = shalt.err (!%p710_p1)
}
  0x43   : > { %s818_s27 = smov 256   ;;  %p1080_p9 = scmp.ne.s32.totalorder %s1076_s26, 0 }
  0x44   : > { %606 = dma.hbm_to_vmem [thread:$0]  (!%p1079_p8), %s941_s8, 256, %s943_s10, %s945_s29, %s818_s27, %s815_s15, %s816_s18  }
  0x45   : > { %187 = sbr.rel (%p1080_p9) target bundleno = 369 (0x171), region = 32  ;;  %s189_s7 = sand.u32 (!%p1080_p9), 1, %s804_s16  }
  0x46   : > { %s978_s9 = sshll.u32 (!%p1080_p9), %s189_s7, 4  ;;  %s190_s11 = scalar_lea.sflag (!%p1080_p9), [#allocation3], %s189_s7 }
  0x47   : > { %s193_s28 = scalar_lea.vmem (!%p1080_p9), [#allocation2], %s978_s9  ;;  %p1081_p12 = scmp.ne.s32.totalorder (!%p1080_p9), %s1075_s25, 0 }
  0x4c   : > { %783 = dma.done.wait (%p1081_p12), %s190_s11, 256  }
  0x4d   : > { %785 = vsyncadd (%p1081_p12), %s190_s11, 4294967040  ;;  %p1082_p2 = scmp.eq.s32.totalorder %s869_s19, 0 }
  0x4f   : > { %787 = dma.done.wait (%p1082_p2), [#allocation6], 512   ;;  %p1083_p8 = pmov %p1082_p2 }
  0x50   : > { %p1084_p3 = scmp.ne.s32.totalorder %s869_s19, 0 }
  0x51   : > { %789 = vsyncadd (%p1083_p8), [#allocation6], 4294966784  ;;  %v819_v0 = vmov (!%p1084_p3), 0.0  }
  0x52   : > { %220 = sbr.rel (%p1084_p3) target bundleno = 89 (0x59), region = 44  ;;  %221 = vst [vmem:[#allocation7] sm:$0x1] (!%p1084_p3), %v819_v0  ;;  %222 = vst [vmem:[#allocation8] sm:$0x1] (!%p1084_p3), %v819_v0 }
  0x59 PF: > { %v232_v1 = vld [vmem:[#allocation5] sm:$0xff]  ;;  %v233_v2 = vld [vmem:[#allocation5 + $0x8] sm:$0xff]  ;;  %v234_v3 = vld [vmem:[#allocation5 + $0x10] sm:$0xff]  ;;  %v820_v4 = vmov 0.0|0.0   ;;  %vm821_vm0 = vmmov 0   ;;  %v822_v7 = vmov 0.0   ;;  %v223_v11 = vlaneseq }
  0x5a   : > { %573 = vmatprep.subr.bf16.mxu0 %v820_v4  ;;  %579 = vmatprep.subr.bf16.mxu1 %v820_v4  ;;  %v574_v5 = vpack.c.bf16 %v233_v2, %v232_v1  ;;  %v235_v6 = vld [vmem:[#allocation5 + $0x18] sm:$0xff]  ;;  %v231_v9 = vld [vmem:[%s193_s28] sm:$0xff]  ;;  %vm243_vm1 = vcmask 261120   ;;  %s529_s25 = sshll.u32 %s869_s19, 3  ;;  %s823_s15 = smov [#allocation7]  }
  0x5b   : > { %559 = vmatprep.mubr.msk.f32.mxu0 %vm821_vm0, %v822_v7  ;;  %570 = vmatprep.mubr.msk.f32.mxu1 %vm821_vm0, %v822_v7  ;;  %v577_v8 = vpack.c.bf16 %v235_v6, %v234_v3  ;;  %v533_v10 = vld [vmem:[%s193_s28 + $0x8] sm:$0xff]  ;;  %v224_v12 = vshrl.u32 %v223_v11, 7  ;;  %v226_v13 = vstv %s529_s25  ;;  %v531_v15 = vld [vmem:[%s1067_s2] ss:$0 sm:$0xff]  ;;  %s437_s18 = sshll.u32 %s823_s15, 4  ;;  %p610_p6 = scmp.eq.s32.totalorder %s869_s19, 1  ;;  %s438_s18 = int_to_ptr.vmem [resolvable:$true] %s437_s18 }
  0x5c   : > { %575 = vmatpush3.bf16.msra.mxu0 %v574_v5  ;;  %581 = vmatpush3.bf16.msra.mxu1 %v574_v5  ;;  %v424_v49 = vld [vmem:[#allocation7] sm:$0x1]  ;;  %v427_v53 = vld [vmem:[#allocation8] sm:$0x1]  ;;  %s824_s8 = smov [#allocation8]   ;;  %s714_s29 = scalar_lea.vmem %s438_s18, 16 }
  0x5d   : > { %576 = vmatprep.subr.bf16.mxu0 %v820_v4  ;;  %582 = vmatprep.subr.bf16.mxu1 %v820_v4  ;;  %v227_v14 = vadd.s32 %v226_v13, %v224_v12  ;;  %s448_s10 = sshll.u32 %s824_s8, 4  ;;  %p715_p7 = scmp.ne.s32.totalorder %s438_s18, %s714_s29  ;;  %s1000_s10 = int_to_ptr.vmem [resolvable:$true] %s448_s10 }
  0x5e   : > { %s720_s5 = scalar_lea.vmem %s438_s18, 32  ;;  %p721_p13 = scmp.lt.s32.totalorder %s438_s18, %s438_s18 }
  0x5f   : > { %vm228_vm2 = vcmp.lt.s32.totalorder %v227_v14, 12  ;;  %p716_p4 = pnand %p715_p7, %p610_p6  ;;  %p722_p5 = scmp.lt.s32.totalorder %s720_s5, %s714_s29 }
  0x60   : > { %578 = vmatpush3.bf16.msra.mxu0 %v577_v8  ;;  %584 = vmatpush3.bf16.msra.mxu1 %v577_v8  ;;  %v530_v16 = vsel %vm228_vm2, 1.0, %v822_v7 }
  0x61   : > { %p717_p11 = pneg %p716_p4  ;;  %p723_p10 = por %p722_p5, %p721_p13 }
  0x63   : > { %560 = vmatmul.mubr.msk.f32.vlgmr.msra.gmra.mrb[0].mxu0 %vm243_vm1, %v231_v9  ;;  %571 = vmatmul.mubr.msk.f32.vlgmr.msra.gmra.mrb[0].mxu1 %vm243_vm1, %v533_v10  ;;  %p724_p0 = pnand %p723_p10, %p717_p11 }
 0x136   : > { %v313_v17 = vpop.f32.mrb[0].mxu0  ;;  %v404_v18 = vpop.f32.mrb[0].mxu1 }
 0x137   : > { %v314_v19 = vadd.f32 %v531_v15, %v313_v17  ;;  %v405_v20 = vadd.f32 %v531_v15, %v404_v18  ;;  %v561_v21 = vpop.f32.mrb[1].mxu0  ;;  %v572_v22 = vpop.f32.mrb[1].mxu1 }
 0x139   : > { %v317_v23 = vmul.f32 %v530_v16, %v314_v19  ;;  %v408_v24 = vmul.f32 %v530_v16, %v405_v20 }
 0x13b   : > { %v318_v25 = vrot.slane %v317_v23, 4  ;;  %v325_v26 = vmul.f32 %v317_v23, %v314_v19  ;;  %v409_v27 = vrot.slane %v408_v24, 4  ;;  %v416_v28 = vmul.f32 %v408_v24, %v405_v20 }
 0x13d   : > { %v319_v29 = vadd.f32 %v318_v25, %v317_v23  ;;  %v326_v30 = vrot.slane %v325_v26, 4  ;;  %v410_v31 = vadd.f32 %v409_v27, %v408_v24  ;;  %v417_v32 = vrot.slane %v416_v28, 4 }
 0x13f   : > { %v320_v33 = vrot.slane %v319_v29, 2  ;;  %v327_v34 = vadd.f32 %v326_v30, %v325_v26  ;;  %v411_v35 = vrot.slane %v410_v31, 2  ;;  %v418_v36 = vadd.f32 %v417_v32, %v416_v28 }
 0x141   : > { %v321_v37 = vadd.f32 %v320_v33, %v319_v29  ;;  %v328_v38 = vrot.slane %v327_v34, 2  ;;  %v412_v39 = vadd.f32 %v411_v35, %v410_v31  ;;  %v419_v40 = vrot.slane %v418_v36, 2 }
 0x143   : > { %v329_v41 = vadd.f32 %v328_v38, %v327_v34  ;;  %v420_v42 = vadd.f32 %v419_v40, %v418_v36  ;;  %v322_v43 = vrot.slane %v321_v37, 1  ;;  %v413_v44 = vrot.slane %v412_v39, 1 }
 0x145   : > { %v330_v45 = vrot.slane %v329_v41, 1  ;;  %v421_v46 = vrot.slane %v420_v42, 1  ;;  %v323_v47 = vadd.f32 %v322_v43, %v321_v37  ;;  %v414_v48 = vadd.f32 %v413_v44, %v412_v39 }
 0x147   : > { %v415_v50 = vadd.f32 %v414_v48, %v323_v47  ;;  %v331_v51 = vadd.f32 %v330_v45, %v329_v41  ;;  %v422_v52 = vadd.f32 %v421_v46, %v420_v42 }
 0x149   : > { %v425_v54 = vadd.f32 %v424_v49, %v415_v50  ;;  %v423_v55 = vadd.f32 %v422_v52, %v331_v51 }
 0x14b   : > { %426 = vst [vmem:[#allocation7] sm:$0x1] %v425_v54  ;;  %v428_v56 = vadd.f32 %v427_v53, %v423_v55 }
 0x14c   : > { %727 = shalt.err (!%p724_p0)
}
 0x14d   : > { %s728_s14 = scalar_lea.hbm %s1068_s3, 16 }
 0x14e   : > { %p729_p1 = scmp.ne.s32.totalorder %s1068_s3, %s728_s14  ;;  %p734_p2 = scmp.lt.u32.totalorder %s728_s14, %s1068_s3 }
 0x150   : > { %p730_p9 = pnand %p729_p1, %p610_p6 }
 0x152   : > { %p731_p12 = pneg %p730_p9 }
 0x154   : > { %p736_p8 = pnand %p734_p2, %p731_p12 }
 0x156   : > { %739 = shalt.err (!%p736_p8)
}
 0x157   : > { %592 = dma.vmem_to_hbm [thread:$0]  (%p610_p6), %s438_s18, 16, %s1068_s3, [#allocation4]   ;;  %429 = vst [vmem:[#allocation8] sm:$0x1] %v428_v56 }
 0x158   : > { %s740_s9 = scalar_lea.vmem %s1000_s10, 16  ;;  %s746_s11 = scalar_lea.vmem %s1000_s10, 32 }
 0x159   : > { %p741_p3 = scmp.ne.s32.totalorder %s1000_s10, %s740_s9  ;;  %p747_p11 = scmp.lt.s32.totalorder %s1000_s10, %s1000_s10 }
 0x15a   : > { %p748_p13 = scmp.lt.s32.totalorder %s746_s11, %s740_s9 }
 0x15b   : > { %p742_p7 = pnand %p741_p3, %p610_p6 }
 0x15c   : > { %p749_p5 = por %p748_p13, %p747_p11 }
 0x15d   : > { %p743_p4 = pneg %p742_p7 }
 0x15f   : > { %p750_p10 = pnand %p749_p5, %p743_p4 }
 0x161   : > { %753 = shalt.err (!%p750_p10)
}
 0x162   : > { %s754_s26 = scalar_lea.hbm %s1069_s4, 16 }
 0x163   : > { %p755_p0 = scmp.ne.s32.totalorder %s1069_s4, %s754_s26  ;;  %p760_p12 = scmp.lt.u32.totalorder %s754_s26, %s1069_s4 }
 0x165   : > { %p756_p1 = pnand %p755_p0, %p610_p6 }
 0x167   : > { %p757_p9 = pneg %p756_p1 }
 0x169   : > { %p762_p2 = pnand %p760_p12, %p757_p9 }
 0x16b   : > { %765 = shalt.err (!%p762_p2)
}
 0x16c   : > { %594 = dma.vmem_to_hbm [thread:$0]  (%p610_p6), %s1000_s10, 16, %s1069_s4, [#allocation9]  }
 0x16d   : > { %791 = dma.done.wait (%p610_p6), [#allocation4], 16  }
 0x16e   : > { %793 = vsyncadd (%p610_p6), [#allocation4], 4294967280 }
 0x16f   : > { %795 = dma.done.wait (%p610_p6), [#allocation9], 16  }
 0x170   : > { %797 = vsyncadd (%p610_p6), [#allocation9], 4294967280 }
 0x171 PF: > { %p18_p8 = scmp.ge.s32.totalorder %s872_s20, 4   ;;  %s1085_s15 = smov %s804_s16 }
 0x172   : > { %s1086_s16 = smov %s808_s17  ;;  %s1087_s17 = smov %s882_s23 }
 0x173   : > { %s1088_s18 = smov %s872_s20  ;;  %20 = sbr.rel (!%p18_p8) target bundleno = 6 (0x6), region = 86 }
 0x17a   :  { %465 = vsyncpa [#allocation3], 1 }
 0x17b   :  { %467 = vsyncpa [#allocation3 + $0x1], 1 }
 0x17c   :  { %468 = vsyncpa [#allocation6], 1 }
 0x17d   :  { %469 = vsyncpa [#allocation4], 1 }
 0x17e   :  { %471 = vsyncpa [#allocation4 + $0x1], 1 }
 0x17f   :  { %472 = vsyncpa [#allocation9], 1 }

</bundles_post_ra>
